<compile_context>
chip_gen: v5e
topology: v5e:2x2
jax: 0.10.0
libtpu: 0.0.40
codegen_flags: <defaults>
</compile_context>

<pallas_src>
import functools

import jax
import jax.numpy as jnp
from jax import lax
from jax.experimental import pallas as pl
from jax.experimental.pallas import tpu as pltpu


def _round_up(x, m):
    return ((x + m - 1) // m) * m


# ---------------------------------------------------------------------------
# Path A: embedding table resident in VMEM (small / medium tables).
# ---------------------------------------------------------------------------
def _vmem_table_kernel(idx_ref, table_ref, out_ref, *, tile_n, vocab):
    """idx_ref: SMEM (N_pad,) i32 | table_ref: VMEM (V, D) | out_ref: (tile_n, D)."""
    base = pl.program_id(0) * tile_n

    # Gather rows straight into the output block (dynamic sublane slices).
    for r in range(tile_n):
        row = jnp.clip(idx_ref[base + r], 0, vocab - 1)
        out_ref[pl.ds(r, 1), :] = table_ref[pl.ds(row, 1), :]

    rows = out_ref[...].astype(jnp.float32)
    norm2 = jnp.sum(rows * rows, axis=-1, keepdims=True)       # (tile_n, 1)
    scale = jnp.where(norm2 > 1.0, lax.rsqrt(norm2), 1.0)      # EUP rsqrt
    out_ref[...] = (rows * scale).astype(out_ref.dtype)


# ---------------------------------------------------------------------------
# Path B: table stays in HBM; per-row DMA gather, double-buffered across steps.
# ---------------------------------------------------------------------------
def _hbm_gather_kernel(idx_ref, table_hbm, out_ref, buf, sems, *,
                       tile_n, n_sem, vocab):
    """idx_ref: SMEM (N_pad,) i32 | table_hbm: HBM (V, D) | out_ref: (tile_n, D)
    buf: VMEM (2, tile_n, D) gather double-buffer | sems: DMA (2, n_sem)."""
    t = pl.program_id(0)
    nt = pl.num_programs(0)
    slot = t % 2

    def row_copy(slot_idx, r, row):
        return pltpu.make_async_copy(
            table_hbm.at[pl.ds(row, 1)],
            buf.at[slot_idx, pl.ds(r, 1)],
            sems.at[slot_idx, r % n_sem],
        )

    def start_tile(tile_idx, slot_idx):
        base = tile_idx * tile_n
        for r in range(tile_n):
            row = jnp.clip(idx_ref[base + r], 0, vocab - 1)
            row_copy(slot_idx, r, row).start()

    # Prime the pipeline: tile 0 -> slot 0 on the very first grid step only.
    @pl.when(t == 0)
    def _():
        start_tile(0, 0)

    # Prefetch the next tile into the other slot while this tile's DMAs drain.
    @pl.when(t + 1 < nt)
    def _():
        start_tile(t + 1, 1 - slot)

    # Wait for this tile's gather.  The src slice passed here is irrelevant for
    # wait(); only the dst shape and semaphore must match what was started.
    for r in range(tile_n):
        row_copy(slot, r, 0).wait()

    rows = buf[slot].astype(jnp.float32)                        # (tile_n, D)
    norm2 = jnp.sum(rows * rows, axis=-1, keepdims=True)
    scale = jnp.where(norm2 > 1.0, lax.rsqrt(norm2), 1.0)
    out_ref[...] = (rows * scale).astype(out_ref.dtype)


# ---------------------------------------------------------------------------
# Wrapper
# ---------------------------------------------------------------------------
def hts_embedding_forward(x, table, *, tile_n=128, force_hbm_gather=False):
    """x: int indices of any shape; table: (num_embedd, embedd_dim) weights."""
    orig_shape = x.shape
    V, D = table.shape
    N = 1
    for s in orig_shape:
        N *= int(s)

    idx = x.reshape(N).astype(jnp.int32)

    # Tile the flattened token axis: multiple of 8 (sublane), no larger than
    # the row-rounded problem.  Default 128 amortizes per-step overhead and
    # keeps plenty of row DMAs in flight.
    tile_n = _round_up(max(8, int(tile_n)), 8)
    tile_n = min(tile_n, _round_up(N, 8))
    num_tiles = (N + tile_n - 1) // tile_n
    n_pad = num_tiles * tile_n
    if n_pad != N:
        idx = jnp.pad(idx, (0, n_pad - N))          # pad with a valid row (0)

    out_dtype = table.dtype
    elem = jnp.dtype(out_dtype).itemsize
    table_bytes = V * D * elem
    out_buf_bytes = 2 * tile_n * D * elem           # double-buffered out block

    # Generation-aware VMEM budget (v7x ~64 MiB/TC vs 128 MiB on v5e/v6e).
    try:
        vmem_cap = int(pltpu.get_tpu_info().vmem_capacity_bytes)
    except Exception:
        vmem_cap = 64 << 20
    vmem_budget = int(vmem_cap * 0.7)

    use_vmem_table = (not force_hbm_gather) and (
        2 * table_bytes + out_buf_bytes + (2 << 20) <= vmem_budget)

    cost = pl.CostEstimate(
        flops=int(3 * n_pad * D),
        transcendentals=int(n_pad),
        bytes_accessed=int(n_pad * D * elem + n_pad * 4
                           + (table_bytes if use_vmem_table
                              else n_pad * D * elem)),
    )

    if use_vmem_table:
        kernel = functools.partial(_vmem_table_kernel, tile_n=tile_n, vocab=V)
        grid_spec = pltpu.PrefetchScalarGridSpec(
            num_scalar_prefetch=1,                              # idx -> SMEM
            grid=(num_tiles,),
            # Full-extent block, constant block index -> copied to VMEM once.
            in_specs=[pl.BlockSpec((V, D), lambda t, idx_ref: (0, 0))],
            out_specs=pl.BlockSpec((tile_n, D), lambda t, idx_ref: (t, 0)),
        )
        dim_sem = ("parallel",)          # no cross-step state: megacore-safe
        vmem_needed = 2 * table_bytes + out_buf_bytes
    else:
        n_sem = min(tile_n, 16)          # DMA-semaphore ring per slot
        kernel = functools.partial(_hbm_gather_kernel, tile_n=tile_n,
                                   n_sem=n_sem, vocab=V)
        grid_spec = pltpu.PrefetchScalarGridSpec(
            num_scalar_prefetch=1,
            grid=(num_tiles,),
            in_specs=[pl.BlockSpec(memory_space=pl.ANY)],       # table in HBM
            out_specs=pl.BlockSpec((tile_n, D), lambda t, idx_ref: (t, 0)),
            scratch_shapes=[
                pltpu.VMEM((2, tile_n, D), out_dtype),          # gather 2-buf
                pltpu.SemaphoreType.DMA((2, n_sem)),
            ],
        )
        # Cross-step prefetch carries state (slot priming at t==0), so this
        # grid axis must run sequentially on a single core.
        dim_sem = ("arbitrary",)
        vmem_needed = 2 * tile_n * D * elem + out_buf_bytes

    vmem_limit = int(min(max(vmem_needed + (8 << 20), 32 << 20),
                         int(vmem_cap * 0.9)))

    out = pl.pallas_call(
        kernel,
        out_shape=jax.ShapeDtypeStruct((n_pad, D), out_dtype),
        grid_spec=grid_spec,
        compiler_params=pltpu.CompilerParams(
            dimension_semantics=dim_sem,
            vmem_limit_bytes=vmem_limit,
        ),
        cost_estimate=cost,
    )(idx, table)

    if n_pad != N:
        out = out[:N]
    return out.reshape(*orig_shape, D)


def _reference(x, table):
    """Pure-JAX reference of nn.Embedding(max_norm=True).forward."""
    gathered = table[x]                                            # (..., D)
    norm = jnp.sqrt(jnp.sum(gathered * gathered, axis=-1, keepdims=True))
    scale = jnp.where(norm > 1.0, 1.0 / (norm + 1e-7), jnp.ones_like(norm))
    return gathered * scale


if __name__ == "__main__":
    num_embedd = 16
    embedd_dim = 32
    batch, seq = 2, 8

    key = jax.random.PRNGKey(0)
    k_w, k_x = jax.random.split(key)

    # nn.Embedding default init: weight ~ N(0, 1)
    table = jax.random.normal(k_w, (num_embedd, embedd_dim), dtype=jnp.float32)
    x = jax.random.randint(k_x, (batch, seq), 0, num_embedd, dtype=jnp.int32)

    ref = _reference(x, table)

    # Path A: VMEM-resident table (auto-selected for this small table).
    out_vmem = jax.block_until_ready(hts_embedding_forward(x, table))
    assert out_vmem.shape == (batch, seq, embedd_dim)
    assert jnp.allclose(out_vmem, ref, atol=1e-5, rtol=1e-5), "VMEM path mismatch"

    # Path B: HBM DMA gather with cross-step double-buffering (2 grid steps so
    # the prime / prefetch / wait sequence is actually exercised).
    out_hbm = jax.block_until_ready(
        hts_embedding_forward(x, table, tile_n=8, force_hbm_gather=True))
    assert out_hbm.shape == (batch, seq, embedd_dim)
    assert jnp.allclose(out_hbm, ref, atol=1e-5, rtol=1e-5), "HBM path mismatch"

    print("KERNEL_OK")
</pallas_src>

<mosaic_0001>
module attributes {stable_mosaic.version = 11 : i64} {
  func.func @_vmem_table_kernel(%arg0: i32, %arg1: memref<16xi32, #tpu.memory_space<smem>>, %arg2: memref<16x32xf32, #tpu.memory_space<vmem>>, %arg3: memref<16x32xf32, #tpu.memory_space<vmem>>) attributes {dimension_semantics = [#tpu.dimension_semantics<parallel>], iteration_bounds = array<i64: 1>, scalar_prefetch = 1 : i64, scratch_operands = 0 : i64, tpu.core_type = #tpu.core_type<tc>, window_params = [{pipeline_mode = #tpu.pipeline_mode<synchronous>, transform_indices = @transform_0, window_bounds = array<i64: 16, 32>}, {transform_indices = @transform_1, window_bounds = array<i64: 16, 32>}]} {
    %c16_i32 = arith.constant 16 : i32
    %0 = arith.muli %arg0, %c16_i32 : i32
    %c0_i32 = arith.constant 0 : i32
    %1 = arith.addi %0, %c0_i32 : i32
    %2 = arith.index_cast %1 : i32 to index
    %3 = memref.load %arg1[%2] : memref<16xi32, #tpu.memory_space<smem>>
    %c0_i32_0 = arith.constant 0 : i32
    %c15_i32 = arith.constant 15 : i32
    %4 = arith.maxsi %c0_i32_0, %3 : i32
    %5 = arith.minsi %c15_i32, %4 : i32
    %6 = arith.index_cast %5 : i32 to index
    %c0 = arith.constant 0 : index
    %7 = vector.load %arg2[%6, %c0] : memref<16x32xf32, #tpu.memory_space<vmem>>, vector<1x32xf32>
    %c0_1 = arith.constant 0 : index
    %c0_2 = arith.constant 0 : index
    %8 = vector.load %arg3[%c0_1, %c0_2] : memref<16x32xf32, #tpu.memory_space<vmem>>, vector<1x32xf32>
    tpu.vector_store %arg3[%c0_1, %c0_2], %7 {strides = array<i32>} : memref<16x32xf32, #tpu.memory_space<vmem>>, vector<1x32xf32>,
    %c1_i32 = arith.constant 1 : i32
    %9 = arith.addi %0, %c1_i32 : i32
    %10 = arith.index_cast %9 : i32 to index
    %11 = memref.load %arg1[%10] : memref<16xi32, #tpu.memory_space<smem>>
    %c0_i32_3 = arith.constant 0 : i32
    %c15_i32_4 = arith.constant 15 : i32
    %12 = arith.maxsi %c0_i32_3, %11 : i32
    %13 = arith.minsi %c15_i32_4, %12 : i32
    %14 = arith.index_cast %13 : i32 to index
    %c0_5 = arith.constant 0 : index
    %15 = vector.load %arg2[%14, %c0_5] : memref<16x32xf32, #tpu.memory_space<vmem>>, vector<1x32xf32>
    %c1 = arith.constant 1 : index
    %c0_6 = arith.constant 0 : index
    %16 = vector.load %arg3[%c1, %c0_6] : memref<16x32xf32, #tpu.memory_space<vmem>>, vector<1x32xf32>
    tpu.vector_store %arg3[%c1, %c0_6], %15 {strides = array<i32>} : memref<16x32xf32, #tpu.memory_space<vmem>>, vector<1x32xf32>,
    %c2_i32 = arith.constant 2 : i32
    %17 = arith.addi %0, %c2_i32 : i32
    %18 = arith.index_cast %17 : i32 to index
    %19 = memref.load %arg1[%18] : memref<16xi32, #tpu.memory_space<smem>>
    %c0_i32_7 = arith.constant 0 : i32
    %c15_i32_8 = arith.constant 15 : i32
    %20 = arith.maxsi %c0_i32_7, %19 : i32
    %21 = arith.minsi %c15_i32_8, %20 : i32
    %22 = arith.index_cast %21 : i32 to index
    %c0_9 = arith.constant 0 : index
    %23 = vector.load %arg2[%22, %c0_9] : memref<16x32xf32, #tpu.memory_space<vmem>>, vector<1x32xf32>
    %c2 = arith.constant 2 : index
    %c0_10 = arith.constant 0 : index
    %24 = vector.load %arg3[%c2, %c0_10] : memref<16x32xf32, #tpu.memory_space<vmem>>, vector<1x32xf32>
    tpu.vector_store %arg3[%c2, %c0_10], %23 {strides = array<i32>} : memref<16x32xf32, #tpu.memory_space<vmem>>, vector<1x32xf32>,
    %c3_i32 = arith.constant 3 : i32
    %25 = arith.addi %0, %c3_i32 : i32
    %26 = arith.index_cast %25 : i32 to index
    %27 = memref.load %arg1[%26] : memref<16xi32, #tpu.memory_space<smem>>
    %c0_i32_11 = arith.constant 0 : i32
    %c15_i32_12 = arith.constant 15 : i32
    %28 = arith.maxsi %c0_i32_11, %27 : i32
    %29 = arith.minsi %c15_i32_12, %28 : i32
    %30 = arith.index_cast %29 : i32 to index
    %c0_13 = arith.constant 0 : index
    %31 = vector.load %arg2[%30, %c0_13] : memref<16x32xf32, #tpu.memory_space<vmem>>, vector<1x32xf32>
    %c3 = arith.constant 3 : index
    %c0_14 = arith.constant 0 : index
    %32 = vector.load %arg3[%c3, %c0_14] : memref<16x32xf32, #tpu.memory_space<vmem>>, vector<1x32xf32>
    tpu.vector_store %arg3[%c3, %c0_14], %31 {strides = array<i32>} : memref<16x32xf32, #tpu.memory_space<vmem>>, vector<1x32xf32>,
    %c4_i32 = arith.constant 4 : i32
    %33 = arith.addi %0, %c4_i32 : i32
    %34 = arith.index_cast %33 : i32 to index
    %35 = memref.load %arg1[%34] : memref<16xi32, #tpu.memory_space<smem>>
    %c0_i32_15 = arith.constant 0 : i32
    %c15_i32_16 = arith.constant 15 : i32
    %36 = arith.maxsi %c0_i32_15, %35 : i32
    %37 = arith.minsi %c15_i32_16, %36 : i32
    %38 = arith.index_cast %37 : i32 to index
    %c0_17 = arith.constant 0 : index
    %39 = vector.load %arg2[%38, %c0_17] : memref<16x32xf32, #tpu.memory_space<vmem>>, vector<1x32xf32>
    %c4 = arith.constant 4 : index
    %c0_18 = arith.constant 0 : index
    %40 = vector.load %arg3[%c4, %c0_18] : memref<16x32xf32, #tpu.memory_space<vmem>>, vector<1x32xf32>
    tpu.vector_store %arg3[%c4, %c0_18], %39 {strides = array<i32>} : memref<16x32xf32, #tpu.memory_space<vmem>>, vector<1x32xf32>,
    %c5_i32 = arith.constant 5 : i32
    %41 = arith.addi %0, %c5_i32 : i32
    %42 = arith.index_cast %41 : i32 to index
    %43 = memref.load %arg1[%42] : memref<16xi32, #tpu.memory_space<smem>>
    %c0_i32_19 = arith.constant 0 : i32
    %c15_i32_20 = arith.constant 15 : i32
    %44 = arith.maxsi %c0_i32_19, %43 : i32
    %45 = arith.minsi %c15_i32_20, %44 : i32
    %46 = arith.index_cast %45 : i32 to index
    %c0_21 = arith.constant 0 : index
    %47 = vector.load %arg2[%46, %c0_21] : memref<16x32xf32, #tpu.memory_space<vmem>>, vector<1x32xf32>
    %c5 = arith.constant 5 : index
    %c0_22 = arith.constant 0 : index
    %48 = vector.load %arg3[%c5, %c0_22] : memref<16x32xf32, #tpu.memory_space<vmem>>, vector<1x32xf32>
    tpu.vector_store %arg3[%c5, %c0_22], %47 {strides = array<i32>} : memref<16x32xf32, #tpu.memory_space<vmem>>, vector<1x32xf32>,
    %c6_i32 = arith.constant 6 : i32
    %49 = arith.addi %0, %c6_i32 : i32
    %50 = arith.index_cast %49 : i32 to index
    %51 = memref.load %arg1[%50] : memref<16xi32, #tpu.memory_space<smem>>
    %c0_i32_23 = arith.constant 0 : i32
    %c15_i32_24 = arith.constant 15 : i32
    %52 = arith.maxsi %c0_i32_23, %51 : i32
    %53 = arith.minsi %c15_i32_24, %52 : i32
    %54 = arith.index_cast %53 : i32 to index
    %c0_25 = arith.constant 0 : index
    %55 = vector.load %arg2[%54, %c0_25] : memref<16x32xf32, #tpu.memory_space<vmem>>, vector<1x32xf32>
    %c6 = arith.constant 6 : index
    %c0_26 = arith.constant 0 : index
    %56 = vector.load %arg3[%c6, %c0_26] : memref<16x32xf32, #tpu.memory_space<vmem>>, vector<1x32xf32>
    tpu.vector_store %arg3[%c6, %c0_26], %55 {strides = array<i32>} : memref<16x32xf32, #tpu.memory_space<vmem>>, vector<1x32xf32>,
    %c7_i32 = arith.constant 7 : i32
    %57 = arith.addi %0, %c7_i32 : i32
    %58 = arith.index_cast %57 : i32 to index
    %59 = memref.load %arg1[%58] : memref<16xi32, #tpu.memory_space<smem>>
    %c0_i32_27 = arith.constant 0 : i32
    %c15_i32_28 = arith.constant 15 : i32
    %60 = arith.maxsi %c0_i32_27, %59 : i32
    %61 = arith.minsi %c15_i32_28, %60 : i32
    %62 = arith.index_cast %61 : i32 to index
    %c0_29 = arith.constant 0 : index
    %63 = vector.load %arg2[%62, %c0_29] : memref<16x32xf32, #tpu.memory_space<vmem>>, vector<1x32xf32>
    %c7 = arith.constant 7 : index
    %c0_30 = arith.constant 0 : index
    %64 = vector.load %arg3[%c7, %c0_30] : memref<16x32xf32, #tpu.memory_space<vmem>>, vector<1x32xf32>
    tpu.vector_store %arg3[%c7, %c0_30], %63 {strides = array<i32>} : memref<16x32xf32, #tpu.memory_space<vmem>>, vector<1x32xf32>,
    %c8_i32 = arith.constant 8 : i32
    %65 = arith.addi %0, %c8_i32 : i32
    %66 = arith.index_cast %65 : i32 to index
    %67 = memref.load %arg1[%66] : memref<16xi32, #tpu.memory_space<smem>>
    %c0_i32_31 = arith.constant 0 : i32
    %c15_i32_32 = arith.constant 15 : i32
    %68 = arith.maxsi %c0_i32_31, %67 : i32
    %69 = arith.minsi %c15_i32_32, %68 : i32
    %70 = arith.index_cast %69 : i32 to index
    %c0_33 = arith.constant 0 : index
    %71 = vector.load %arg2[%70, %c0_33] : memref<16x32xf32, #tpu.memory_space<vmem>>, vector<1x32xf32>
    %c8 = arith.constant 8 : index
    %c0_34 = arith.constant 0 : index
    %72 = vector.load %arg3[%c8, %c0_34] : memref<16x32xf32, #tpu.memory_space<vmem>>, vector<1x32xf32>
    tpu.vector_store %arg3[%c8, %c0_34], %71 {strides = array<i32>} : memref<16x32xf32, #tpu.memory_space<vmem>>, vector<1x32xf32>,
    %c9_i32 = arith.constant 9 : i32
    %73 = arith.addi %0, %c9_i32 : i32
    %74 = arith.index_cast %73 : i32 to index
    %75 = memref.load %arg1[%74] : memref<16xi32, #tpu.memory_space<smem>>
    %c0_i32_35 = arith.constant 0 : i32
    %c15_i32_36 = arith.constant 15 : i32
    %76 = arith.maxsi %c0_i32_35, %75 : i32
    %77 = arith.minsi %c15_i32_36, %76 : i32
    %78 = arith.index_cast %77 : i32 to index
    %c0_37 = arith.constant 0 : index
    %79 = vector.load %arg2[%78, %c0_37] : memref<16x32xf32, #tpu.memory_space<vmem>>, vector<1x32xf32>
    %c9 = arith.constant 9 : index
    %c0_38 = arith.constant 0 : index
    %80 = vector.load %arg3[%c9, %c0_38] : memref<16x32xf32, #tpu.memory_space<vmem>>, vector<1x32xf32>
    tpu.vector_store %arg3[%c9, %c0_38], %79 {strides = array<i32>} : memref<16x32xf32, #tpu.memory_space<vmem>>, vector<1x32xf32>,
    %c10_i32 = arith.constant 10 : i32
    %81 = arith.addi %0, %c10_i32 : i32
    %82 = arith.index_cast %81 : i32 to index
    %83 = memref.load %arg1[%82] : memref<16xi32, #tpu.memory_space<smem>>
    %c0_i32_39 = arith.constant 0 : i32
    %c15_i32_40 = arith.constant 15 : i32
    %84 = arith.maxsi %c0_i32_39, %83 : i32
    %85 = arith.minsi %c15_i32_40, %84 : i32
    %86 = arith.index_cast %85 : i32 to index
    %c0_41 = arith.constant 0 : index
    %87 = vector.load %arg2[%86, %c0_41] : memref<16x32xf32, #tpu.memory_space<vmem>>, vector<1x32xf32>
    %c10 = arith.constant 10 : index
    %c0_42 = arith.constant 0 : index
    %88 = vector.load %arg3[%c10, %c0_42] : memref<16x32xf32, #tpu.memory_space<vmem>>, vector<1x32xf32>
    tpu.vector_store %arg3[%c10, %c0_42], %87 {strides = array<i32>} : memref<16x32xf32, #tpu.memory_space<vmem>>, vector<1x32xf32>,
    %c11_i32 = arith.constant 11 : i32
    %89 = arith.addi %0, %c11_i32 : i32
    %90 = arith.index_cast %89 : i32 to index
    %91 = memref.load %arg1[%90] : memref<16xi32, #tpu.memory_space<smem>>
    %c0_i32_43 = arith.constant 0 : i32
    %c15_i32_44 = arith.constant 15 : i32
    %92 = arith.maxsi %c0_i32_43, %91 : i32
    %93 = arith.minsi %c15_i32_44, %92 : i32
    %94 = arith.index_cast %93 : i32 to index
    %c0_45 = arith.constant 0 : index
    %95 = vector.load %arg2[%94, %c0_45] : memref<16x32xf32, #tpu.memory_space<vmem>>, vector<1x32xf32>
    %c11 = arith.constant 11 : index
    %c0_46 = arith.constant 0 : index
    %96 = vector.load %arg3[%c11, %c0_46] : memref<16x32xf32, #tpu.memory_space<vmem>>, vector<1x32xf32>
    tpu.vector_store %arg3[%c11, %c0_46], %95 {strides = array<i32>} : memref<16x32xf32, #tpu.memory_space<vmem>>, vector<1x32xf32>,
    %c12_i32 = arith.constant 12 : i32
    %97 = arith.addi %0, %c12_i32 : i32
    %98 = arith.index_cast %97 : i32 to index
    %99 = memref.load %arg1[%98] : memref<16xi32, #tpu.memory_space<smem>>
    %c0_i32_47 = arith.constant 0 : i32
    %c15_i32_48 = arith.constant 15 : i32
    %100 = arith.maxsi %c0_i32_47, %99 : i32
    %101 = arith.minsi %c15_i32_48, %100 : i32
    %102 = arith.index_cast %101 : i32 to index
    %c0_49 = arith.constant 0 : index
    %103 = vector.load %arg2[%102, %c0_49] : memref<16x32xf32, #tpu.memory_space<vmem>>, vector<1x32xf32>
    %c12 = arith.constant 12 : index
    %c0_50 = arith.constant 0 : index
    %104 = vector.load %arg3[%c12, %c0_50] : memref<16x32xf32, #tpu.memory_space<vmem>>, vector<1x32xf32>
    tpu.vector_store %arg3[%c12, %c0_50], %103 {strides = array<i32>} : memref<16x32xf32, #tpu.memory_space<vmem>>, vector<1x32xf32>,
    %c13_i32 = arith.constant 13 : i32
    %105 = arith.addi %0, %c13_i32 : i32
    %106 = arith.index_cast %105 : i32 to index
    %107 = memref.load %arg1[%106] : memref<16xi32, #tpu.memory_space<smem>>
    %c0_i32_51 = arith.constant 0 : i32
    %c15_i32_52 = arith.constant 15 : i32
    %108 = arith.maxsi %c0_i32_51, %107 : i32
    %109 = arith.minsi %c15_i32_52, %108 : i32
    %110 = arith.index_cast %109 : i32 to index
    %c0_53 = arith.constant 0 : index
    %111 = vector.load %arg2[%110, %c0_53] : memref<16x32xf32, #tpu.memory_space<vmem>>, vector<1x32xf32>
    %c13 = arith.constant 13 : index
    %c0_54 = arith.constant 0 : index
    %112 = vector.load %arg3[%c13, %c0_54] : memref<16x32xf32, #tpu.memory_space<vmem>>, vector<1x32xf32>
    tpu.vector_store %arg3[%c13, %c0_54], %111 {strides = array<i32>} : memref<16x32xf32, #tpu.memory_space<vmem>>, vector<1x32xf32>,
    %c14_i32 = arith.constant 14 : i32
    %113 = arith.addi %0, %c14_i32 : i32
    %114 = arith.index_cast %113 : i32 to index
    %115 = memref.load %arg1[%114] : memref<16xi32, #tpu.memory_space<smem>>
    %c0_i32_55 = arith.constant 0 : i32
    %c15_i32_56 = arith.constant 15 : i32
    %116 = arith.maxsi %c0_i32_55, %115 : i32
    %117 = arith.minsi %c15_i32_56, %116 : i32
    %118 = arith.index_cast %117 : i32 to index
    %c0_57 = arith.constant 0 : index
    %119 = vector.load %arg2[%118, %c0_57] : memref<16x32xf32, #tpu.memory_space<vmem>>, vector<1x32xf32>
    %c14 = arith.constant 14 : index
    %c0_58 = arith.constant 0 : index
    %120 = vector.load %arg3[%c14, %c0_58] : memref<16x32xf32, #tpu.memory_space<vmem>>, vector<1x32xf32>
    tpu.vector_store %arg3[%c14, %c0_58], %119 {strides = array<i32>} : memref<16x32xf32, #tpu.memory_space<vmem>>, vector<1x32xf32>,
    %c15_i32_59 = arith.constant 15 : i32
    %121 = arith.addi %0, %c15_i32_59 : i32
    %122 = arith.index_cast %121 : i32 to index
    %123 = memref.load %arg1[%122] : memref<16xi32, #tpu.memory_space<smem>>
    %c0_i32_60 = arith.constant 0 : i32
    %c15_i32_61 = arith.constant 15 : i32
    %124 = arith.maxsi %c0_i32_60, %123 : i32
    %125 = arith.minsi %c15_i32_61, %124 : i32
    %126 = arith.index_cast %125 : i32 to index
    %c0_62 = arith.constant 0 : index
    %127 = vector.load %arg2[%126, %c0_62] : memref<16x32xf32, #tpu.memory_space<vmem>>, vector<1x32xf32>
    %c15 = arith.constant 15 : index
    %c0_63 = arith.constant 0 : index
    %128 = vector.load %arg3[%c15, %c0_63] : memref<16x32xf32, #tpu.memory_space<vmem>>, vector<1x32xf32>
    tpu.vector_store %arg3[%c15, %c0_63], %127 {strides = array<i32>} : memref<16x32xf32, #tpu.memory_space<vmem>>, vector<1x32xf32>,
    %c0_64 = arith.constant 0 : index
    %c0_65 = arith.constant 0 : index
    %129 = vector.load %arg3[%c0_64, %c0_65] : memref<16x32xf32, #tpu.memory_space<vmem>>, vector<16x32xf32>
    %130 = arith.mulf %129, %129 : vector<16x32xf32>
    %cst = arith.constant dense<0.000000e+00> : vector<16xf32>
    %131 = vector.multi_reduction <add>, %130, %cst [1] : vector<16x32xf32> to vector<16xf32>
    %132 = vector.shape_cast %131 : vector<16xf32> to vector<16x1xf32>
    %cst_66 = arith.constant 1.000000e+00 : f32
    %133 = vector.broadcast %cst_66 : f32 to vector<16x1xf32>
    %134 = arith.cmpf ogt, %132, %133 : vector<16x1xf32>
    %135 = math.rsqrt %132 : vector<16x1xf32>
    %cst_67 = arith.constant 1.000000e+00 : f32
    %136 = vector.broadcast %cst_67 : f32 to vector<16x1xf32>
    %137 = arith.select %134, %135, %136 : vector<16x1xi1>, vector<16x1xf32>
    %138 = vector.broadcast %137 : vector<16x1xf32> to vector<16x32xf32>
    %139 = arith.mulf %129, %138 : vector<16x32xf32>
    %c0_68 = arith.constant 0 : index
    %c0_69 = arith.constant 0 : index
    %140 = vector.load %arg3[%c0_68, %c0_69] : memref<16x32xf32, #tpu.memory_space<vmem>>, vector<16x32xf32>
    tpu.vector_store %arg3[%c0_68, %c0_69], %139 {strides = array<i32>} : memref<16x32xf32, #tpu.memory_space<vmem>>, vector<16x32xf32>,
    return
  }
  func.func @transform_0(%arg0: i32, %arg1: memref<16xi32, #tpu.memory_space<smem>>) -> (i32, i32) {
    %c0_i32 = arith.constant 0 : i32
    %c0_i32_0 = arith.constant 0 : i32
    %c0_i32_1 = arith.constant 0 : i32
    return %c0_i32, %c0_i32_0 : i32, i32
  }
  func.func @transform_1(%arg0: i32, %arg1: memref<16xi32, #tpu.memory_space<smem>>) -> (i32, i32) {
    %c0_i32 = arith.constant 0 : i32
    %c0_i32_0 = arith.constant 0 : i32
    return %arg0, %c0_i32 : i32, i32
  }
}

</mosaic_0001>

<bundles_post_ra>
// kernel: tpu_custom_call.1
= control target key start
LH: loop header
LB: loop body
LE: loop exit
PB: predicated region body
PF: predicated region fallthrough
CT: control target
= control target key end

     0   :  { %s455_s12 = smov [#allocation3]   ;;  %s535_s0 = inlined_call_operand.hbm [shape: s32[16], index: 0, kind: input, shape index: {}]   ;;  %s536_s1 = inlined_call_operand.hbm [shape: f32[16,32], index: 1, kind: input, shape index: {}]   ;;  %s537_s2 = inlined_call_operand.hbm [shape: f32[16,32], index: 2, kind: output, shape index: {}]  }
   0x1   :  { %s8_s11 = sshll.u32 %s535_s0, 4  ;;  %s9_s11 = int_to_ptr.hbm [resolvable:$true] %s8_s11 }
   0x2   :  { %11 = dma.hbm_to_smem %s9_s11, 16, %s455_s12, [#allocation2] }
   0x3   :  { %449 = dma.done.wait [#allocation2], 16 }
   0x4   :  { %450 = vsyncadd [#allocation2], 4294967280 }
   0x5   :  { %14 = sfence }
   0x6   :  { %15 = vsyncpa [#allocation5], 0 }
   0x7   :  { %16 = vsyncpa [#allocation6], 0  ;;  %s21_s15 = sshll.u32 %s536_s1, 4  ;;  %s456_s16 = smov [#allocation4]   ;;  %s22_s15 = int_to_ptr.hbm [resolvable:$true] %s21_s15 }
   0x8   :  { %s23_s17 = sshll.u32 %s456_s16, 4  ;;  %s457_s18 = smov 128   ;;  %s24_s17 = int_to_ptr.vmem [resolvable:$true] %s23_s17 }
   0x9   :  { %s458_s19 = smov 8  }
   0xa   :  { %29 = dma.hbm_to_vmem [thread:$0]  %s22_s15, 256, %s24_s17, [#allocation5], %s457_s18, %s457_s18, %s458_s19  }
   0xb   :  { %451 = dma.done.wait [#allocation5], 256  }
   0xc   :  { %452 = vsyncadd [#allocation5], 4294967040  ;;  %s35_s0 = sld [smem:[#allocation3]]  ;;  %vm42_vm0 = vcmask 253952   ;;  %vm183_vm1 = vcmask 261120  }
   0xd   :  { %s258_s20 = sld [smem:[#allocation3 + $0x1]] }
   0xe   :  { %s264_s21 = sld [smem:[#allocation3 + $0x2]] }
   0xf   :  { %s270_s22 = sld [smem:[#allocation3 + $0x3]] }
  0x10   :  { %s484_s23 = sld [smem:[#allocation3 + $0x4]] }
  0x11   :  { %s486_s24 = sld [smem:[#allocation3 + $0x5]] }
  0x12   :  { %p36_p0 = scmp.gt.s32.totalorder %s35_s0, 0  ;;  %p253_p1 = scmp.lt.s32.totalorder %s35_s0, 15 }
  0x13   :  { %p46_p2 = scmp.gt.s32.totalorder %s258_s20, 0  ;;  %p259_p3 = scmp.lt.s32.totalorder %s258_s20, 15 }
  0x14   :  { %s539_s0 = smov (!%p36_p0, %s35_s0), 0  ;;  %p55_p4 = scmp.gt.s32.totalorder %s264_s21, 0 }
  0x15   :  { %s541_s20 = smov (!%p46_p2, %s258_s20), 0  ;;  %s543_s0 = smov (!%p253_p1, %s539_s0), 15 }
  0x16   :  { %s545_s20 = smov (!%p259_p3, %s541_s20), 15  ;;  %s40_s1 = scalar_lea.vmem [#allocation4], %s543_s0 }
  0x17   :  { %v41_v0 = vld [vmem:[%s40_s1] sm:$0x1]  ;;  %p265_p5 = scmp.lt.s32.totalorder %s264_s21, 15  ;;  %s50_s25 = scalar_lea.vmem [#allocation4], %s545_s20 }
  0x18   :  { %43 = vst.msk [vmem:[#allocation7] sm:$0x1] %vm42_vm0, %v41_v0  ;;  %v51_v1 = vld [vmem:[%s50_s25] sm:$0x1]  ;;  %s547_s21 = smov (!%p55_p4, %s264_s21), 0  ;;  %p64_p6 = scmp.gt.s32.totalorder %s270_s22, 0 }
  0x19   :  { %52 = vst.msk [vmem:[#allocation7 + $0x1] sm:$0x1] %vm42_vm0, %v51_v1  ;;  %p271_p7 = scmp.lt.s32.totalorder %s270_s22, 15  ;;  %s549_s21 = smov (!%p265_p5, %s547_s21), 15 }
  0x1a   :  { %s551_s22 = smov (!%p64_p6, %s270_s22), 0  ;;  %p73_p8 = scmp.gt.s32.totalorder %s484_s23, 0 }
  0x1b   :  { %s59_s26 = scalar_lea.vmem [#allocation4], %s549_s21  ;;  %s553_s22 = smov (!%p271_p7, %s551_s22), 15 }
  0x1c   :  { %v60_v2 = vld [vmem:[%s59_s26] sm:$0x1]  ;;  %s74_s27 = scalar_select %p73_p8, %s484_s23, 0 }
  0x1d   :  { %61 = vst.msk [vmem:[#allocation7 + $0x2] sm:$0x1] %vm42_vm0, %v60_v2  ;;  %p277_p9 = scmp.lt.s32.totalorder %s484_s23, 15  ;;  %s68_s28 = scalar_lea.vmem [#allocation4], %s553_s22 }
  0x1e   :  { %v69_v3 = vld [vmem:[%s68_s28] sm:$0x1]  ;;  %p82_p10 = scmp.gt.s32.totalorder %s486_s24, 0  ;;  %p283_p11 = scmp.lt.s32.totalorder %s486_s24, 15 }
  0x1f   :  { %70 = vst.msk [vmem:[#allocation7 + $0x3] sm:$0x1] %vm42_vm0, %v69_v3  ;;  %s555_s27 = smov (!%p277_p9, %s74_s27), 15  ;;  %s288_s29 = sld [smem:[#allocation3 + $0x6]] }
  0x20   :  { %s557_s24 = smov (!%p82_p10, %s486_s24), 0  ;;  %s77_s30 = scalar_lea.vmem [#allocation4], %s555_s27 }
  0x21   :  { %v78_v4 = vld [vmem:[%s77_s30] sm:$0x1]  ;;  %s559_s24 = smov (!%p283_p11, %s557_s24), 15  ;;  %s294_s3 = sld [smem:[#allocation3 + $0x7]] }
  0x22   :  { %79 = vst.msk [vmem:[#allocation7 + $0x4] sm:$0x1] %vm42_vm0, %v78_v4  ;;  %s300_s4 = sld [smem:[#allocation3 + $0x8]]  ;;  %s86_s5 = scalar_lea.vmem [#allocation4], %s559_s24 }
  0x23   :  { %v87_v5 = vld [vmem:[%s86_s5] sm:$0x1]  ;;  %s306_s6 = sld [smem:[#allocation3 + $0x9]]  ;;  %s459_s26 = smov [#allocation7]  }
  0x24   :  { %88 = vst.msk [vmem:[#allocation7 + $0x5] sm:$0x1] %vm42_vm0, %v87_v5  ;;  %s500_s7 = sld [smem:[#allocation3 + $0xa]]  ;;  %s222_s27 = sshll.u32 %s459_s26, 4  ;;  %s223_s27 = int_to_ptr.vmem [resolvable:$true] %s222_s27 }
  0x25   :  { %p91_p12 = scmp.gt.s32.totalorder %s288_s29, 0  ;;  %p289_p13 = scmp.lt.s32.totalorder %s288_s29, 15 }
  0x26   :  { %s502_s8 = sld [smem:[#allocation3 + $0xb]]  ;;  %s224_s30 = sshll.u32 %s537_s2, 4  ;;  %s225_s30 = int_to_ptr.hbm [resolvable:$true] %s224_s30 }
  0x27   :  { %s561_s29 = smov (!%p91_p12, %s288_s29), 0  ;;  %p100_p0 = scmp.gt.s32.totalorder %s294_s3, 0 }
  0x28   :  { %p295_p1 = scmp.lt.s32.totalorder %s294_s3, 15  ;;  %s563_s29 = smov (!%p289_p13, %s561_s29), 15 }
  0x29   :  { %s565_s3 = smov (!%p100_p0, %s294_s3), 0  ;;  %p109_p2 = scmp.gt.s32.totalorder %s300_s4, 0 }
  0x2a   :  { %s95_s9 = scalar_lea.vmem [#allocation4], %s563_s29  ;;  %s567_s3 = smov (!%p295_p1, %s565_s3), 15 }
  0x2b   :  { %v96_v6 = vld [vmem:[%s95_s9] sm:$0x1]  ;;  %s110_s10 = scalar_select %p109_p2, %s300_s4, 0 }
  0x2c   :  { %97 = vst.msk [vmem:[#allocation7 + $0x6] sm:$0x1] %vm42_vm0, %v96_v6  ;;  %p301_p3 = scmp.lt.s32.totalorder %s300_s4, 15  ;;  %s104_s11 = scalar_lea.vmem [#allocation4], %s567_s3 }
  0x2d   :  { %v105_v7 = vld [vmem:[%s104_s11] sm:$0x1]  ;;  %p118_p4 = scmp.gt.s32.totalorder %s306_s6, 0  ;;  %p307_p5 = scmp.lt.s32.totalorder %s306_s6, 15 }
  0x2e   :  { %106 = vst.msk [vmem:[#allocation7 + $0x7] sm:$0x1] %vm42_vm0, %v105_v7  ;;  %s569_s10 = smov (!%p301_p3, %s110_s10), 15  ;;  %p127_p6 = scmp.gt.s32.totalorder %s500_s7, 0 }
  0x2f   :  { %s571_s6 = smov (!%p118_p4, %s306_s6), 0  ;;  %s113_s12 = scalar_lea.vmem [#allocation4], %s569_s10 }
  0x30   :  { %v114_v8 = vld [vmem:[%s113_s12] sm:$0x1]  ;;  %s573_s6 = smov (!%p307_p5, %s571_s6), 15  ;;  %p313_p7 = scmp.lt.s32.totalorder %s500_s7, 15 }
  0x31   :  { %115 = vst.msk [vmem:[#allocation7 + $0x8] sm:$0x1] %vm42_vm0, %v114_v8  ;;  %s128_s13 = scalar_select %p127_p6, %s500_s7, 0 }
  0x32   :  { %s122_s14 = scalar_lea.vmem [#allocation4], %s573_s6  ;;  %p136_p8 = scmp.gt.s32.totalorder %s502_s8, 0 }
  0x33   :  { %v123_v9 = vld [vmem:[%s122_s14] sm:$0x1]  ;;  %p319_p9 = scmp.lt.s32.totalorder %s502_s8, 15  ;;  %s575_s13 = smov (!%p313_p7, %s128_s13), 15 }
  0x34   :  { %124 = vst.msk [vmem:[#allocation7 + $0x9] sm:$0x1] %vm42_vm0, %v123_v9  ;;  %s577_s8 = smov (!%p136_p8, %s502_s8), 0  ;;  %s324_s15 = sld [smem:[#allocation3 + $0xc]] }
  0x35   :  { %v512_v10 = vld [vmem:[#allocation7] sm:$0xff]  ;;  %s131_s16 = scalar_lea.vmem [#allocation4], %s575_s13  ;;  %s579_s8 = smov (!%p319_p9, %s577_s8), 15 }
  0x36   :  { %v181_v11 = vmul.f32 %v512_v10, %v512_v10  ;;  %v132_v13 = vld [vmem:[%s131_s16] sm:$0x1]  ;;  %s330_s17 = sld [smem:[#allocation3 + $0xd]]  ;;  %s140_s0 = scalar_lea.vmem [#allocation4], %s579_s8 }
  0x37   :  { %133 = vst.msk [vmem:[#allocation7 + $0xa] sm:$0x1] %vm42_vm0, %v132_v13  ;;  %v141_v14 = vld [vmem:[%s140_s0] sm:$0x1]  ;;  %s336_s20 = sld [smem:[#allocation3 + $0xe]] }
  0x38   :  { %v184_v12 = vsel %vm183_vm1, %v181_v11, 0.0  ;;  %142 = vst.msk [vmem:[#allocation7 + $0xb] sm:$0x1] %vm42_vm0, %v141_v14  ;;  %s342_s21 = sld [smem:[#allocation3 + $0xf]] }
  0x39   :  { %185 = vadd.xlane.f32.xlu0 %v184_v12 }
  0x3a   :  { %p145_p10 = scmp.gt.s32.totalorder %s324_s15, 0  ;;  %p325_p11 = scmp.lt.s32.totalorder %s324_s15, 15 }
  0x3c   :  { %s581_s15 = smov (!%p145_p10, %s324_s15), 0  ;;  %p154_p12 = scmp.gt.s32.totalorder %s330_s17, 0 }
  0x3d   :  { %p331_p13 = scmp.lt.s32.totalorder %s330_s17, 15  ;;  %s583_s15 = smov (!%p325_p11, %s581_s15), 15 }
  0x3e   :  { %s585_s17 = smov (!%p154_p12, %s330_s17), 0  ;;  %p163_p0 = scmp.gt.s32.totalorder %s336_s20, 0 }
  0x3f   :  { %s149_s22 = scalar_lea.vmem [#allocation4], %s583_s15  ;;  %s587_s17 = smov (!%p331_p13, %s585_s17), 15 }
  0x40   :  { %v150_v15 = vld [vmem:[%s149_s22] sm:$0x1]  ;;  %s164_s23 = scalar_select %p163_p0, %s336_s20, 0 }
  0x41   :  { %151 = vst.msk [vmem:[#allocation7 + $0xc] sm:$0x1] %vm42_vm0, %v150_v15  ;;  %p337_p1 = scmp.lt.s32.totalorder %s336_s20, 15  ;;  %s158_s24 = scalar_lea.vmem [#allocation4], %s587_s17 }
  0x42   :  { %v159_v16 = vld [vmem:[%s158_s24] sm:$0x1]  ;;  %p172_p2 = scmp.gt.s32.totalorder %s342_s21, 0  ;;  %p343_p3 = scmp.lt.s32.totalorder %s342_s21, 15 }
  0x43   :  { %160 = vst.msk [vmem:[#allocation7 + $0xd] sm:$0x1] %vm42_vm0, %v159_v16  ;;  %s589_s23 = smov (!%p337_p1, %s164_s23), 15 }
  0x44   :  { %s591_s21 = smov (!%p172_p2, %s342_s21), 0  ;;  %s167_s1 = scalar_lea.vmem [#allocation4], %s589_s23 }
  0x45   :  { %v168_v17 = vld [vmem:[%s167_s1] sm:$0x1]  ;;  %s593_s21 = smov (!%p343_p3, %s591_s21), 15 }
  0x46   :  { %169 = vst.msk [vmem:[#allocation7 + $0xe] sm:$0x1] %vm42_vm0, %v168_v17  ;;  %s176_s25 = scalar_lea.vmem [#allocation4], %s593_s21 }
  0x47   :  { %v177_v18 = vld [vmem:[%s176_s25] sm:$0x1] }
  0x48   :  { %178 = vst.msk [vmem:[#allocation7 + $0xf] sm:$0x1] %vm42_vm0, %v177_v18 }
  0x4f   :  { %v180_v19 = vld [vmem:[#allocation7 + $0x8] sm:$0xff] }
  0x50   :  { %v182_v20 = vmul.f32 %v180_v19, %v180_v19 }
  0x52   :  { %v187_v21 = vsel %vm183_vm1, %v182_v20, 0.0 }
  0x53   :  { %188 = vadd.xlane.f32.xlu0 %v187_v21 }
  0xac   :  { %v186_v22 = vpop.xlane.xlu0 %185 }
  0xad   :  { %385 = vrsqrt.f32 %v186_v22  ;;  %vm198_vm3 = vweird.f32 %v186_v22  ;;  %vm190_vm5 = vcmp.gt.f32.partialorder %v186_v22, 1.0 }
  0xb3   :  { %v386_v23 = vpop.eup %385 }
  0xb4   :  { %v193_v24 = vmul.f32 %v386_v23, %v186_v22  ;;  %vm199_vm2 = vweird.f32 %v386_v23 }
  0xb5   :  { %vm200_vm4 = vmor %vm198_vm3, %vm199_vm2 }
  0xb6   :  { %v194_v25 = vmul.f32 %v386_v23, %v193_v24 }
  0xb8   :  { %v195_v26 = vmul.f32 0.5, %v194_v25 }
  0xba   :  { %v196_v27 = vsub.f32 1.5, %v195_v26 }
  0xbc   :  { %v197_v28 = vmul.f32 %v386_v23, %v196_v27 }
  0xbe   :  { %v201_v29 = vsel %vm200_vm4, %v386_v23, %v197_v28 }
  0xbf   :  { %v212_v30 = vsel %vm190_vm5, %v201_v29, 1.0 }
  0xc0   :  { %v214_v31 = vmul.f32 %v212_v30, %v512_v10 }
  0xc2   :  { %216 = vst.msk [vmem:[#allocation7] sm:$0xff] %vm183_vm1, %v214_v31 }
  0xc6   :  { %v189_v32 = vpop.xlane.xlu0 %188 }
  0xc7   :  { %387 = vrsqrt.f32 %v189_v32  ;;  %vm208_vm7 = vweird.f32 %v189_v32  ;;  %vm191_vm9 = vcmp.gt.f32.partialorder %v189_v32, 1.0 }
  0xcd   :  { %v388_v33 = vpop.eup %387 }
  0xce   :  { %v203_v34 = vmul.f32 %v388_v33, %v189_v32  ;;  %vm209_vm6 = vweird.f32 %v388_v33 }
  0xcf   :  { %vm210_vm8 = vmor %vm208_vm7, %vm209_vm6 }
  0xd0   :  { %v204_v35 = vmul.f32 %v388_v33, %v203_v34 }
  0xd2   :  { %v205_v36 = vmul.f32 0.5, %v204_v35 }
  0xd4   :  { %v206_v37 = vsub.f32 1.5, %v205_v36 }
  0xd6   :  { %v207_v38 = vmul.f32 %v388_v33, %v206_v37 }
  0xd8   :  { %v211_v39 = vsel %vm210_vm8, %v388_v33, %v207_v38 }
  0xd9   :  { %v213_v40 = vsel %vm191_vm9, %v211_v39, 1.0 }
  0xda   :  { %v215_v41 = vmul.f32 %v213_v40, %v180_v19 }
  0xdc   :  { %217 = vst.msk [vmem:[#allocation7 + $0x8] sm:$0xff] %vm183_vm1, %v215_v41 }
  0xdd   :  { %230 = dma.vmem_to_hbm [thread:$0]  %s223_s27, 256, %s225_s30, [#allocation6], %s457_s18, %s457_s18, %s458_s19  }
  0xde   :  { %453 = dma.done.wait [#allocation6], 256  }
  0xdf   :  { %454 = vsyncadd [#allocation6], 4294967040 }
  0xe0   :  { %235 = vsyncpa [#allocation5], 1 }
  0xe1   :  { %236 = vsyncpa [#allocation6], 1 }

</bundles_post_ra>
